<compile_context>
chip_gen: v6e
topology: v6e:2x2x1
jax: 0.10.0
libtpu: 0.0.40
codegen_flags: <defaults>
</compile_context>

<pallas_src>
import functools

import jax
import jax.numpy as jnp
from jax.experimental import pallas as pl
from jax.experimental.pallas import tpu as pltpu


def mf_bpr_kernel(idx_ref, uembT_ref, iembT_ref, out_ref):
    """One batch tile of MF-BPR scores.

    Tile shapes:
      idx_ref   : (3, tb) int32 -- row 0 user, row 1 item_i, row 2 item_j
      uembT_ref : (D, U)  bf16  -- user table, transposed, resident in VMEM
      iembT_ref : (D, I)  bf16  -- item table, transposed, resident in VMEM
      out_ref   : (2, tb) f32   -- row 0 rating_i, row 1 rating_j (lane-dense)
    """
    tb = idx_ref.shape[1]
    n_users = uembT_ref.shape[1]
    n_items = iembT_ref.shape[1]

    user_idx = idx_ref[0:1, :]                                            # (1, tb)
    # Put both item index rows side by side so the two item gathers share a
    # single one-hot build and a single MXU call.
    item_idx = jnp.concatenate([idx_ref[1:2, :], idx_ref[2:3, :]], axis=1)  # (1, 2*tb)

    # One-hot gather masks: one iota per table, bool -> bf16 directly (no f32
    # intermediate cast pass).
    user_rows = jax.lax.broadcasted_iota(jnp.int32, (n_users, tb), 0)
    item_rows = jax.lax.broadcasted_iota(jnp.int32, (n_items, 2 * tb), 0)
    u_oh = (user_rows == user_idx).astype(jnp.bfloat16)                   # (U, tb)
    item_oh = (item_rows == item_idx).astype(jnp.bfloat16)                # (I, 2*tb)

    # Row gathers on the MXU: exact ({0,1} bf16 one-hot, f32 accumulation).
    user_fT = jnp.dot(uembT_ref[...], u_oh,
                      preferred_element_type=jnp.float32)                 # (D, tb)
    item_fT = jnp.dot(iembT_ref[...], item_oh,
                      preferred_element_type=jnp.float32)                 # (D, 2*tb)

    # BPR scores: per-batch-column dot product along D. f32 epilogue (also the
    # right choice on v5e, which has no bf16 VPU).
    rating_i = jnp.sum(user_fT * item_fT[:, :tb], axis=0, keepdims=True)  # (1, tb)
    rating_j = jnp.sum(user_fT * item_fT[:, tb:], axis=0, keepdims=True)  # (1, tb)
    out_ref[...] = jnp.concatenate([rating_i, rating_j], axis=0)          # one (2, tb) store


def _vmem_budget_bytes(dim, n_users, n_items, tb):
    """Rough VMEM budget: single-buffered tables + double-buffered I/O blocks +
    bf16 one-hot intermediates, with 2x headroom, capped at v7x physical VMEM."""
    table_bytes = 2 * dim * (n_users + n_items)            # bf16 tables (1 buffer each)
    io_bytes = 2 * (3 * tb * 4 + 2 * tb * 4)               # idx + out blocks, 2 buffers
    onehot_bytes = 2 * (n_users + 2 * n_items) * tb        # bf16 one-hot intermediates
    est = table_bytes + io_bytes + onehot_bytes
    return int(min(64 << 20, max(32 << 20, 2 * est)))


def prepare_tables(params):
    """One-time table prep (cast to bf16 + transpose). Doing this once keeps the
    per-call HBM traffic down to indices-in / scores-out only."""
    return {
        "uembT": params["user_emb"].astype(jnp.bfloat16).T,    # (D, U)
        "iembT": params["item_emb"].astype(jnp.bfloat16).T,    # (D, I)
    }


def mf_bpr_forward(user, item_i, item_j, tables, *, tb=1024):
    """rating_i, rating_j = MF_BPR(user, item_i, item_j). Each is (B,) f32."""
    assert tb % 128 == 0, "batch tile must be a multiple of 128 (lane-dense)"

    uembT = tables["uembT"]                                   # (D, U) bf16
    iembT = tables["iembT"]                                   # (D, I) bf16
    dim, n_users = uembT.shape
    _, n_items = iembT.shape

    batch = user.shape[0]
    grid_b = pl.cdiv(batch, tb)
    padded = grid_b * tb

    # Pack the three index vectors into one (3, padded) int32 array: a single
    # small input DMA per grid step instead of three.
    idx = jnp.stack([user.astype(jnp.int32),
                     item_i.astype(jnp.int32),
                     item_j.astype(jnp.int32)], axis=0)       # (3, B)
    # Pad with index 0 (a valid row); pad columns are sliced off below.
    idx = jnp.pad(idx, ((0, 0), (0, padded - batch)))         # (3, padded)

    # Resident tables: constant index_map + single-buffered (no point holding a
    # second copy in VMEM -- matters most on v7x with 64 MiB VMEM).
    def table_spec(n_rows):
        return pl.BlockSpec((dim, n_rows), lambda i: (0, 0),
                            pipeline_mode=pl.Buffered(1))

    out = pl.pallas_call(
        mf_bpr_kernel,
        out_shape=jax.ShapeDtypeStruct((2, padded), jnp.float32),
        grid_spec=pltpu.PrefetchScalarGridSpec(
            num_scalar_prefetch=0,
            grid=(grid_b,),
            in_specs=[
                pl.BlockSpec((3, tb), lambda i: (0, i)),      # packed indices
                table_spec(n_users),                          # user table^T
                table_spec(n_items),                          # item table^T
            ],
            out_specs=pl.BlockSpec((2, tb), lambda i: (0, i)),  # packed scores
        ),
        compiler_params=pltpu.CompilerParams(
            dimension_semantics=("parallel",),                # v7x: shard tiles over 2 TCs
            vmem_limit_bytes=_vmem_budget_bytes(dim, n_users, n_items, tb)),
    )(idx, uembT, iembT)

    return out[0, :batch], out[1, :batch]


def init_params(key, user_num, item_num, dimension):
    ku, ki = jax.random.split(key, 2)
    return {
        # PyTorch init is normal(std=0.01); use a larger std so the correctness
        # check compares meaningful magnitudes.
        "user_emb": jax.random.normal(ku, (user_num, dimension), jnp.float32) * 0.1,
        "item_emb": jax.random.normal(ki, (item_num, dimension), jnp.float32) * 0.1,
    }


def mf_bpr_reference(user, item_i, item_j, params):
    """Pure-JAX reference (same bf16 table storage as the kernel)."""
    uemb = params["user_emb"].astype(jnp.bfloat16).astype(jnp.float32)
    iemb = params["item_emb"].astype(jnp.bfloat16).astype(jnp.float32)
    user_f = uemb[user]
    item_f_i = iemb[item_i]
    item_f_j = iemb[item_j]
    rating_i = jnp.sum(user_f * item_f_i, axis=-1)
    rating_j = jnp.sum(user_f * item_f_j, axis=-1)
    return rating_i, rating_j


if __name__ == "__main__":
    user_num, item_num, dimension = 64, 80, 32
    batch = 300      # deliberately not a multiple of the tile (exercises padding)
    tb = 256         # small demo tile (2 grid steps); production default is 1024+

    key = jax.random.PRNGKey(0)
    pkey, kuser, kii, kij = jax.random.split(key, 4)
    params = init_params(pkey, user_num, item_num, dimension)
    tables = prepare_tables(params)   # one-time bf16 cast + transpose

    user = jax.random.randint(kuser, (batch,), 0, user_num, dtype=jnp.int32)
    item_i = jax.random.randint(kii, (batch,), 0, item_num, dtype=jnp.int32)
    item_j = jax.random.randint(kij, (batch,), 0, item_num, dtype=jnp.int32)

    fwd = jax.jit(functools.partial(mf_bpr_forward, tb=tb))
    rating_i, rating_j = fwd(user, item_i, item_j, tables)
    jax.block_until_ready((rating_i, rating_j))

    ref_i, ref_j = mf_bpr_reference(user, item_i, item_j, params)
    assert rating_i.shape == (batch,) and rating_j.shape == (batch,)
    assert jnp.allclose(rating_i, ref_i, atol=1e-5, rtol=1e-4), "rating_i mismatch"
    assert jnp.allclose(rating_j, ref_j, atol=1e-5, rtol=1e-4), "rating_j mismatch"

    print("KERNEL_OK")
</pallas_src>

<mosaic_0001>
module attributes {stable_mosaic.version = 11 : i64} {
  func.func @mf_bpr_kernel(%arg0: i32, %arg1: memref<3x256xi32, #tpu.memory_space<vmem>>, %arg2: memref<32x64xbf16, #tpu.memory_space<vmem>>, %arg3: memref<32x80xbf16, #tpu.memory_space<vmem>>, %arg4: memref<2x256xf32, #tpu.memory_space<vmem>>) attributes {dimension_semantics = [#tpu.dimension_semantics<parallel>], iteration_bounds = array<i64: 2>, scalar_prefetch = 0 : i64, scratch_operands = 0 : i64, tpu.core_type = #tpu.core_type<tc>, window_params = [{transform_indices = @transform_0, window_bounds = array<i64: 3, 256>}, {pipeline_mode = #tpu.pipeline_mode<synchronous>, transform_indices = @transform_1, window_bounds = array<i64: 32, 64>}, {pipeline_mode = #tpu.pipeline_mode<synchronous>, transform_indices = @transform_2, window_bounds = array<i64: 32, 80>}, {transform_indices = @transform_3, window_bounds = array<i64: 2, 256>}]} {
    %c0 = arith.constant 0 : index
    %c0_0 = arith.constant 0 : index
    %0 = vector.load %arg1[%c0, %c0_0] : memref<3x256xi32, #tpu.memory_space<vmem>>, vector<1x256xi32>
    %c1 = arith.constant 1 : index
    %c0_1 = arith.constant 0 : index
    %1 = vector.load %arg1[%c1, %c0_1] : memref<3x256xi32, #tpu.memory_space<vmem>>, vector<1x256xi32>
    %c2 = arith.constant 2 : index
    %c0_2 = arith.constant 0 : index
    %2 = vector.load %arg1[%c2, %c0_2] : memref<3x256xi32, #tpu.memory_space<vmem>>, vector<1x256xi32>
    %3 = tpu.concatenate %1, %2 in 1 : vector<1x256xi32>, vector<1x256xi32> -> vector<1x512xi32>
    %4 = tpu.iota {dimensions = array<i32: 0>} : vector<64x256xi32>
    %5 = tpu.iota {dimensions = array<i32: 0>} : vector<80x512xi32>
    %6 = vector.broadcast %0 : vector<1x256xi32> to vector<64x256xi32>
    %7 = arith.cmpi eq, %4, %6 : vector<64x256xi32>
    %8 = arith.extui %7 : vector<64x256xi1> to vector<64x256xi32>
    %9 = arith.sitofp %8 : vector<64x256xi32> to vector<64x256xf32>
    %10 = arith.truncf %9 : vector<64x256xf32> to vector<64x256xbf16>
    %11 = vector.broadcast %3 : vector<1x512xi32> to vector<80x512xi32>
    %12 = arith.cmpi eq, %5, %11 : vector<80x512xi32>
    %13 = arith.extui %12 : vector<80x512xi1> to vector<80x512xi32>
    %14 = arith.sitofp %13 : vector<80x512xi32> to vector<80x512xf32>
    %15 = arith.truncf %14 : vector<80x512xf32> to vector<80x512xbf16>
    %c0_3 = arith.constant 0 : index
    %c0_4 = arith.constant 0 : index
    %16 = vector.load %arg2[%c0_3, %c0_4] : memref<32x64xbf16, #tpu.memory_space<vmem>>, vector<32x64xbf16>
    %cst = arith.constant dense<0.000000e+00> : vector<32x256xf32>
    %17 = tpu.matmul %16, %10, %cst {dimension_numbers = #tpu.dot_dimension_numbers<[1], [0], [0], [1], [0, 0, 1, 1], [], []>} : vector<32x64xbf16>, vector<64x256xbf16>, vector<32x256xf32> -> vector<32x256xf32>
    %c0_5 = arith.constant 0 : index
    %c0_6 = arith.constant 0 : index
    %18 = vector.load %arg3[%c0_5, %c0_6] : memref<32x80xbf16, #tpu.memory_space<vmem>>, vector<32x80xbf16>
    %cst_7 = arith.constant dense<0.000000e+00> : vector<32x512xf32>
    %19 = tpu.matmul %18, %15, %cst_7 {dimension_numbers = #tpu.dot_dimension_numbers<[1], [0], [0], [1], [0, 0, 1, 1], [], []>} : vector<32x80xbf16>, vector<80x512xbf16>, vector<32x512xf32> -> vector<32x512xf32>
    %20 = vector.extract_strided_slice %19 {offsets = [0, 0], sizes = [32, 256], strides = [1, 1]} : vector<32x512xf32> to vector<32x256xf32>
    %21 = arith.mulf %17, %20 : vector<32x256xf32>
    %cst_8 = arith.constant dense<0.000000e+00> : vector<256xf32>
    %22 = vector.multi_reduction <add>, %21, %cst_8 [0] : vector<32x256xf32> to vector<256xf32>
    %23 = vector.shape_cast %22 : vector<256xf32> to vector<1x256xf32>
    %24 = vector.extract_strided_slice %19 {offsets = [0, 256], sizes = [32, 256], strides = [1, 1]} : vector<32x512xf32> to vector<32x256xf32>
    %25 = arith.mulf %17, %24 : vector<32x256xf32>
    %cst_9 = arith.constant dense<0.000000e+00> : vector<256xf32>
    %26 = vector.multi_reduction <add>, %25, %cst_9 [0] : vector<32x256xf32> to vector<256xf32>
    %27 = vector.shape_cast %26 : vector<256xf32> to vector<1x256xf32>
    %28 = tpu.concatenate %23, %27 in 0 : vector<1x256xf32>, vector<1x256xf32> -> vector<2x256xf32>
    %c0_10 = arith.constant 0 : index
    %c0_11 = arith.constant 0 : index
    %29 = vector.load %arg4[%c0_10, %c0_11] : memref<2x256xf32, #tpu.memory_space<vmem>>, vector<2x256xf32>
    tpu.vector_store %arg4[%c0_10, %c0_11], %28 {strides = array<i32>} : memref<2x256xf32, #tpu.memory_space<vmem>>, vector<2x256xf32>,
    return
  }
  func.func @transform_0(%arg0: i32) -> (i32, i32) {
    %c0_i32 = arith.constant 0 : i32
    %c0_i32_0 = arith.constant 0 : i32
    return %c0_i32, %arg0 : i32, i32
  }
  func.func @transform_1(%arg0: i32) -> (i32, i32) {
    %c0_i32 = arith.constant 0 : i32
    %c0_i32_0 = arith.constant 0 : i32
    %c0_i32_1 = arith.constant 0 : i32
    return %c0_i32, %c0_i32_0 : i32, i32
  }
  func.func @transform_2(%arg0: i32) -> (i32, i32) {
    %c0_i32 = arith.constant 0 : i32
    %c0_i32_0 = arith.constant 0 : i32
    %c0_i32_1 = arith.constant 0 : i32
    return %c0_i32, %c0_i32_0 : i32, i32
  }
  func.func @transform_3(%arg0: i32) -> (i32, i32) {
    %c0_i32 = arith.constant 0 : i32
    %c0_i32_0 = arith.constant 0 : i32
    return %c0_i32, %arg0 : i32, i32
  }
}

</mosaic_0001>

<bundles_post_ra>
// kernel: mf_bpr_forward.1
= control target key start
LH: loop header
LB: loop body
LE: loop exit
PB: predicated region body
PF: predicated region fallthrough
CT: control target
= control target key end

     0   :  { %s941_s12 = smov 0   ;;  %s1249_s0 = inlined_call_operand.vmem [shape: s32[3,512], index: 0, kind: input, shape index: {}]   ;;  %s1250_s1 = inlined_call_operand.vmem [shape: bf16[32,64], index: 1, kind: input, shape index: {}]   ;;  %s1251_s2 = inlined_call_operand.vmem [shape: bf16[32,80], index: 2, kind: input, shape index: {}]   ;;  %s1252_s3 = inlined_call_operand.vmem [shape: f32[2,512], index: 3, kind: output, shape index: {}]  }
   0x1 LB: > { %s751_s13 = sadd.s32 4294967295, %s917_s12   ;;  %p755_p0 = scmp.ge.s32.totalorder %s917_s12, 1  ;;  %s917_s12 = sphi %s941_s12, %s13_s12  }
   0x2   : > { %p138_p1 = scmp.lt.s32.totalorder %s917_s12, 3 }
   0x4   : > { %p139_p2 = pnand %p755_p0, %p138_p1 }
   0x5   : > { %s756_s14 = sshll.u32 (!%p139_p2), %s751_s13, 1 }
   0x6   : > { %142 = sbr.rel (%p139_p2) target bundleno = 282 (0x11a), region = 32  ;;  %p163_p3 = scmp.lt.s32.totalorder (!%p139_p2), %s756_s14, 3 }
   0xb   : > { %v180_v0 = vlaneseq  ;;  %v919_v1 = vmov 0   ;;  %s1268_s14 = smov (!%p163_p3, %s756_s14), 3  ;;  %v920_v21 = vmov 1.0|1.0   ;;  %v907_v28 = vld [vmem:[%s1250_s1] sm:$0xff]   ;;  %v909_v34 = vld [vmem:[%s1250_s1 + $0x8] sm:$0xff]  }
   0xc   : > { %480 = vmatprep.mubr.bf16.mxu0 %v919_v1  ;;  %554 = vmatprep.mubr.bf16.mxu1 %v919_v1  ;;  %s757_s15 = sshll.u32 %s1268_s14, 2  ;;  %v908_v31 = vld [vmem:[%s1251_s2] sm:$0xff]   ;;  %v910_v38 = vld [vmem:[%s1251_s2 + $0x8] sm:$0xff]   ;;  %s759_s27 = sshll.u32 %s1268_s14, 1 }
   0xd   : > { %v951_v2 = vshrl.u32 %v180_v0, 7  ;;  %s166_s18 = scalar_lea.vmem %s1249_s0, %s757_s15  ;;  %s172_s30 = scalar_lea.vmem %s1252_s3, %s759_s27 }
   0xe   : > { %v175_v9 = vld [vmem:[%s166_s18] ss:$4 sm:$0x3]  ;;  %v760_v10 = vld [vmem:[%s166_s18 + $0x1] ss:$4 sm:$0x3] }
   0xf   : > { %v956_v3 = vsub.s32 0, %v951_v2  ;;  %v959_v4 = vsub.s32 1, %v951_v2  ;;  %v966_v5 = vadd.s32 48, %v951_v2  ;;  %v969_v6 = vadd.s32 56, %v951_v2 }
  0x10   : > { %v972_v7 = vadd.s32 64, %v951_v2  ;;  %v975_v8 = vadd.s32 72, %v951_v2  ;;  %v986_v15 = vadd.s32 32, %v951_v2  ;;  %v989_v16 = vadd.s32 40, %v951_v2 }
  0x11   : > { %v183_v11 = vrot.slane %v760_v10, %v956_v3  ;;  %v187_v12 = vrot.slane %v760_v10, %v959_v4  ;;  %v980_v13 = vrot.slane %v175_v9, %v959_v4  ;;  %v983_v14 = vrot.slane %v175_v9, %v956_v3  ;;  %v761_v22 = vld [vmem:[%s166_s18 + $0x2] ss:$4 sm:$0x3] }
  0x12   : > { %v1006_v19 = vadd.s32 16, %v951_v2  ;;  %v1009_v20 = vadd.s32 24, %v951_v2  ;;  %v195_v23 = vrot.slane %v761_v22, %v959_v4  ;;  %v1046_v24 = vadd.s32 8, %v951_v2 }
  0x13   : > { %vm228_vm0 = vcmp.eq.s32.totalorder %v966_v5, %v980_v13  ;;  %vm230_vm1 = vcmp.eq.s32.totalorder %v969_v6, %v980_v13  ;;  %v996_v17 = vrot.slane %v183_v11, %v956_v3  ;;  %v999_v18 = vrot.slane %v187_v12, %v956_v3 }
  0x14   : > { %vm820_vm2 = vmpackc.low %vm230_vm1, %vm228_vm0  ;;  %vm227_vm3 = vcmp.eq.s32.totalorder %v966_v5, %v983_v14  ;;  %vm229_vm4 = vcmp.eq.s32.totalorder %v969_v6, %v983_v14  ;;  %vm224_vm11 = vcmp.eq.s32.totalorder %v986_v15, %v980_v13  ;;  %vm226_vm12 = vcmp.eq.s32.totalorder %v989_v16, %v980_v13 }
  0x15   : > { %821 = vmatprep.subr.msk.bf16.mxu0 %vm820_vm2, %v920_v21  ;;  %vm822_vm5 = vmpackc.low %vm229_vm4, %vm227_vm3  ;;  %vm320_vm6 = vcmp.eq.s32.totalorder %v972_v7, %v999_v18  ;;  %vm324_vm7 = vcmp.eq.s32.totalorder %v975_v8, %v999_v18  ;;  %vm319_vm8 = vcmp.eq.s32.totalorder %v972_v7, %v996_v17  ;;  %vm323_vm9 = vcmp.eq.s32.totalorder %v975_v8, %v996_v17 }
  0x16   : > { %823 = vmatpush1.bf16.msk.msra.mxu0 %vm822_vm5, %v920_v21  ;;  %vm840_vm10 = vmpackc.low %vm324_vm7, %vm320_vm6  ;;  %vm223_vm13 = vcmp.eq.s32.totalorder %v986_v15, %v983_v14  ;;  %vm225_vm14 = vcmp.eq.s32.totalorder %v989_v16, %v983_v14  ;;  %vm312_vm0 = vcmp.eq.s32.totalorder %v966_v5, %v999_v18  ;;  %vm316_vm1 = vcmp.eq.s32.totalorder %v969_v6, %v999_v18 }
  0x17   : > { %841 = vmatprep.subr.msk.bf16.mxu1 %vm840_vm10, %v920_v21  ;;  %vm842_vm15 = vmpackc.low %vm323_vm9, %vm319_vm8  ;;  %vm311_vm3 = vcmp.eq.s32.totalorder %v966_v5, %v996_v17  ;;  %vm315_vm4 = vcmp.eq.s32.totalorder %v969_v6, %v996_v17  ;;  %vm220_vm6 = vcmp.eq.s32.totalorder %v1006_v19, %v980_v13  ;;  %vm222_vm7 = vcmp.eq.s32.totalorder %v1009_v20, %v980_v13 }
  0x18   : > { %843 = vmatpush1.bf16.msk.msra.mxu1 %vm842_vm15, %v920_v21  ;;  %vm824_vm2 = vmpackc.low %vm226_vm12, %vm224_vm11  ;;  %v191_v25 = vrot.slane %v761_v22, %v956_v3  ;;  %vm219_vm9 = vcmp.eq.s32.totalorder %v1006_v19, %v983_v14  ;;  %vm221_vm10 = vcmp.eq.s32.totalorder %v1009_v20, %v983_v14  ;;  %vm304_vm12 = vcmp.eq.s32.totalorder %v986_v15, %v999_v18 }
  0x19   : > { %825 = vmatprep.subr.msk.bf16.mxu0 %vm824_vm2, %v920_v21  ;;  %vm826_vm5 = vmpackc.low %vm225_vm14, %vm223_vm13  ;;  %vm308_vm13 = vcmp.eq.s32.totalorder %v989_v16, %v999_v18  ;;  %vm303_vm15 = vcmp.eq.s32.totalorder %v986_v15, %v996_v17  ;;  %v1065_v26 = vrot.slane %v195_v23, %v956_v3  ;;  %vm216_vm2 = vcmp.eq.s32.totalorder %v951_v2, %v980_v13 }
  0x1a   : > { %827 = vmatpush1.bf16.msk.msra.mxu0 %vm826_vm5, %v920_v21  ;;  %vm844_vm8 = vmpackc.low %vm316_vm1, %vm312_vm0  ;;  %vm307_vm0 = vcmp.eq.s32.totalorder %v989_v16, %v996_v17  ;;  %v1073_v27 = vrot.slane %v191_v25, %v956_v3  ;;  %vm215_vm5 = vcmp.eq.s32.totalorder %v951_v2, %v983_v14 }
  0x1b   : > { %845 = vmatprep.subr.msk.bf16.mxu1 %vm844_vm8, %v920_v21  ;;  %vm846_vm11 = vmpackc.low %vm315_vm4, %vm311_vm3  ;;  %vm218_vm3 = vcmp.eq.s32.totalorder %v1046_v24, %v980_v13  ;;  %vm296_vm8 = vcmp.eq.s32.totalorder %v1006_v19, %v999_v18 }
  0x1c   : > { %847 = vmatpush1.bf16.msk.msra.mxu1 %vm846_vm11, %v920_v21  ;;  %vm828_vm14 = vmpackc.low %vm222_vm7, %vm220_vm6  ;;  %vm217_vm6 = vcmp.eq.s32.totalorder %v1046_v24, %v983_v14  ;;  %vm295_vm11 = vcmp.eq.s32.totalorder %v1006_v19, %v996_v17 }
  0x1d   : > { %829 = vmatprep.subr.msk.bf16.mxu0 %vm828_vm14, %v920_v21  ;;  %vm830_vm1 = vmpackc.low %vm221_vm10, %vm219_vm9  ;;  %vm300_vm9 = vcmp.eq.s32.totalorder %v1009_v20, %v999_v18  ;;  %vm322_vm14 = vcmp.eq.s32.totalorder %v972_v7, %v1065_v26 }
  0x1e   : > { %831 = vmatpush1.bf16.msk.msra.mxu0 %vm830_vm1, %v920_v21  ;;  %vm848_vm4 = vmpackc.low %vm308_vm13, %vm304_vm12  ;;  %vm299_vm12 = vcmp.eq.s32.totalorder %v1009_v20, %v996_v17  ;;  %vm441_vm1 = vcmask 523264  }
  0x1f   : > { %849 = vmatprep.subr.msk.bf16.mxu1 %vm848_vm4, %v920_v21  ;;  %vm850_vm7 = vmpackc.low %vm307_vm0, %vm303_vm15  ;;  %vm326_vm15 = vcmp.eq.s32.totalorder %v975_v8, %v1065_v26 }
  0x20   : > { %851 = vmatpush1.bf16.msk.msra.mxu1 %vm850_vm7, %v920_v21  ;;  %vm832_vm10 = vmpackc.low %vm218_vm3, %vm216_vm2  ;;  %vm321_vm2 = vcmp.eq.s32.totalorder %v972_v7, %v1073_v27  ;;  %vm325_vm3 = vcmp.eq.s32.totalorder %v975_v8, %v1073_v27 }
  0x21   : > { %833 = vmatprep.subr.msk.bf16.mxu0 %vm832_vm10, %v920_v21  ;;  %vm834_vm13 = vmpackc.low %vm217_vm6, %vm215_vm5  ;;  %vm288_vm5 = vcmp.eq.s32.totalorder %v951_v2, %v999_v18  ;;  %vm292_vm6 = vcmp.eq.s32.totalorder %v1046_v24, %v999_v18 }
  0x22   : > { %835 = vmatpush1.bf16.msk.msra.mxu0 %vm834_vm13, %v920_v21  ;;  %vm852_vm0 = vmpackc.low %vm300_vm9, %vm296_vm8  ;;  %vm287_vm8 = vcmp.eq.s32.totalorder %v951_v2, %v996_v17  ;;  %vm291_vm9 = vcmp.eq.s32.totalorder %v1046_v24, %v996_v17 }
  0x23   : > { %853 = vmatprep.subr.msk.bf16.mxu1 %vm852_vm0, %v920_v21  ;;  %vm854_vm4 = vmpackc.low %vm299_vm12, %vm295_vm11  ;;  %vm314_vm11 = vcmp.eq.s32.totalorder %v966_v5, %v1065_v26  ;;  %vm318_vm12 = vcmp.eq.s32.totalorder %v969_v6, %v1065_v26 }
  0x24   : > { %855 = vmatpush1.bf16.msk.msra.mxu1 %vm854_vm4, %v920_v21  ;;  %vm1109_vm7 = vmpackc.low %vm326_vm15, %vm322_vm14  ;;  %vm313_vm14 = vcmp.eq.s32.totalorder %v966_v5, %v1073_v27  ;;  %vm317_vm15 = vcmp.eq.s32.totalorder %v969_v6, %v1073_v27 }
  0x25   : > { %836 = vmatmul.mubr.msk.bf16.vlgmr.msra.gmra.mxu0 %vm441_vm1, %v907_v28  ;;  %863 = vmatprep.subr.msk.bf16.mxu0 %vm1109_vm7, %v920_v21  ;;  %vm1121_vm10 = vmpackc.low %vm325_vm3, %vm321_vm2  ;;  %vm306_vm2 = vcmp.eq.s32.totalorder %v986_v15, %v1065_v26  ;;  %vm310_vm3 = vcmp.eq.s32.totalorder %v989_v16, %v1065_v26 }
  0x26   : > { %865 = vmatpush1.bf16.msk.msra.mxu0 %vm1121_vm10, %v920_v21  ;;  %vm856_vm13 = vmpackc.low %vm292_vm6, %vm288_vm5  ;;  %490 = vmatprep.mubr.bf16.mxu0 %v919_v1  ;;  %vm515_vm5 = vcmask 654336   ;;  %vm305_vm6 = vcmp.eq.s32.totalorder %v986_v15, %v1073_v27 }
  0x27   : > { %857 = vmatprep.subr.msk.bf16.mxu1 %vm856_vm13, %v920_v21  ;;  %vm858_vm0 = vmpackc.low %vm291_vm9, %vm287_vm8  ;;  %vm309_vm8 = vcmp.eq.s32.totalorder %v989_v16, %v1073_v27 }
  0x28   : > { %859 = vmatpush1.bf16.msk.msra.mxu1 %vm858_vm0, %v920_v21  ;;  %vm1146_vm4 = vmpackc.low %vm318_vm12, %vm314_vm11  ;;  %vm298_vm11 = vcmp.eq.s32.totalorder %v1006_v19, %v1065_v26  ;;  %vm302_vm12 = vcmp.eq.s32.totalorder %v1009_v20, %v1065_v26  ;;  %vm301_vm0 = vcmp.eq.s32.totalorder %v1009_v20, %v1073_v27 }
  0x29   : > { %867 = vmatprep.subr.msk.bf16.mxu0 %vm1146_vm4, %v920_v21  ;;  %vm1157_vm9 = vmpackc.low %vm317_vm15, %vm313_vm14  ;;  %887 = vmatprep.subr.msk.bf16.mxu1 %vm1109_vm7, %v920_v21  ;;  %vm297_vm15 = vcmp.eq.s32.totalorder %v1006_v19, %v1073_v27 }
  0x2a   : > { %869 = vmatpush1.bf16.msk.msra.mxu0 %vm1157_vm9, %v920_v21  ;;  %vm1174_vm13 = vmpackc.low %vm310_vm3, %vm306_vm2  ;;  %vm294_vm2 = vcmp.eq.s32.totalorder %v1046_v24, %v1065_v26 }
  0x2b   : > { %860 = vmatmul.mubr.msk.bf16.vlgmr.msra.gmra.mxu1 %vm515_vm5, %v908_v31  ;;  %871 = vmatprep.subr.msk.bf16.mxu0 %vm1174_vm13, %v920_v21  ;;  %vm1182_vm7 = vmpackc.low %vm309_vm8, %vm305_vm6  ;;  %vm293_vm6 = vcmp.eq.s32.totalorder %v1046_v24, %v1073_v27 }
  0x2c   : > { %892 = vmatpush1.bf16.msk.msra.mxu1 %vm1121_vm10, %v920_v21  ;;  %vm1189_vm14 = vmpackc.low %vm302_vm12, %vm298_vm11  ;;  %564 = vmatprep.mubr.bf16.mxu1 %v919_v1  ;;  %vm290_vm10 = vcmp.eq.s32.totalorder %v951_v2, %v1065_v26 }
  0x2d   : > { %837 = vmatmul.mubr.msk.bf16.gmra.mxu0 %vm441_vm1, %v909_v34  ;;  %888 = vmatprep.subr.msk.bf16.mxu1 %vm1146_vm4, %v920_v21  ;;  %vm876_vm1 = vmpackc.low %vm301_vm0, %vm297_vm15  ;;  %vm289_vm4 = vcmp.eq.s32.totalorder %v951_v2, %v1073_v27 }
  0x2e   : > { %873 = vmatpush1.bf16.msk.msra.mxu0 %vm1182_vm7, %v920_v21  ;;  %607 = vmatprep.mubr.bf16.mxu0 %v919_v1  ;;  %vm878_vm3 = vmpackc.low %vm294_vm2, %vm290_vm10 }
  0x2f   : > { %875 = vmatprep.subr.msk.bf16.mxu0 %vm1189_vm14, %v920_v21  ;;  %vm880_vm8 = vmpackc.low %vm293_vm6, %vm289_vm4 }
  0x30   : > { %893 = vmatpush1.bf16.msk.msra.mxu1 %vm1157_vm9, %v920_v21 }
  0x31   : > { %889 = vmatprep.subr.msk.bf16.mxu1 %vm1174_vm13, %v920_v21 }
  0x32   : > { %877 = vmatpush1.bf16.msk.msra.mxu0 %vm876_vm1, %v920_v21 }
  0x33   : > { %861 = vmatmul.mubr.msk.bf16.gmra.mxu1 %vm515_vm5, %v910_v38  ;;  %879 = vmatprep.subr.msk.bf16.mxu0 %vm878_vm3, %v920_v21 }
  0x34   : > { %894 = vmatpush1.bf16.msk.msra.mxu1 %vm1182_vm7, %v920_v21  ;;  %617 = vmatprep.mubr.bf16.mxu1 %v919_v1 }
  0x35   : > { %890 = vmatprep.subr.msk.bf16.mxu1 %vm1189_vm14, %v920_v21 }
  0x36   : > { %881 = vmatpush1.bf16.msk.msra.mxu0 %vm880_vm8, %v920_v21 }
  0x38   : > { %895 = vmatpush1.bf16.msk.msra.mxu1 %vm876_vm1, %v920_v21 }
  0x39   : > { %882 = vmatmul.mubr.msk.bf16.vlgmr.msra.gmra.mxu0 %vm515_vm5, %v908_v31  ;;  %891 = vmatprep.subr.msk.bf16.mxu1 %vm878_vm3, %v920_v21 }
  0x3c   : > { %896 = vmatpush1.bf16.msk.msra.mxu1 %vm880_vm8, %v920_v21 }
  0x3f   : > { %883 = vmatmul.mubr.msk.bf16.vlgmr.msra.gmra.mxu1 %vm515_vm5, %v910_v38  ;;  %vm680_vm5 = vcmask 1040384  }
  0xe5   : > { %v482_v39 = vpop.f32.mrf.mxu0 }
  0xe7   : > { %v484_v40 = vpop.f32.mrf.mxu0 }
  0xe9   : > { %v486_v41 = vpop.f32.mrf.mxu0 }
  0xeb   : > { %v488_v42 = vpop.f32.mrf.mxu0  ;;  %v556_v43 = vpop.f32.mrf.mxu1 }
  0xec   : > { %v628_v53 = vmul.f32 %v556_v43, %v482_v39 }
  0xed   : > { %v492_v44 = vpop.f32.mrf.mxu0  ;;  %v558_v45 = vpop.f32.mrf.mxu1 }
  0xee   : > { %v629_v56 = vmul.f32 %v558_v45, %v484_v40 }
  0xef   : > { %v494_v46 = vpop.f32.mrf.mxu0  ;;  %v560_v47 = vpop.f32.mrf.mxu1 }
  0xf0   : > { %v630_v49 = vmul.f32 %v560_v47, %v486_v41 }
  0xf1   : > { %v562_v48 = vpop.f32.mrf.mxu1  ;;  %v496_v50 = vpop.f32.mrf.mxu0 }
  0xf2   : > { %v631_v52 = vmul.f32 %v562_v48, %v488_v42  ;;  %v636_v58 = vadd.f32 %v630_v49, %v628_v53 }
  0xf3   : > { %v566_v51 = vpop.f32.mrf.mxu1  ;;  %v498_v59 = vpop.f32.mrf.mxu0 }
  0xf4   : > { %v632_v54 = vmul.f32 %v566_v51, %v492_v44  ;;  %v645_v61 = vadd.f32 %v631_v52, %v629_v56 }
  0xf5   : > { %v568_v55 = vpop.f32.mrf.mxu1 }
  0xf6   : > { %v633_v57 = vmul.f32 %v568_v55, %v494_v46  ;;  %v637_v63 = vadd.f32 %v636_v58, %v632_v54 }
  0xf7   : > { %v570_v60 = vpop.f32.mrf.mxu1 }
  0xf8   : > { %v634_v62 = vmul.f32 %v570_v60, %v496_v50  ;;  %v646_v2 = vadd.f32 %v645_v61, %v633_v57 }
  0xf9   : > { %v572_v0 = vpop.f32.mrf.mxu1  ;;  %v609_v1 = vpop.f32.mrf.mxu0 }
  0xfa   : > { %v635_v3 = vmul.f32 %v572_v0, %v498_v59  ;;  %v638_v4 = vadd.f32 %v637_v63, %v634_v62  ;;  %v654_v8 = vmul.f32 %v609_v1, %v482_v39 }
  0xfb   : > { %v611_v5 = vpop.f32.mrf.mxu0 }
  0xfc   : > { %v647_v6 = vadd.f32 %v646_v2, %v635_v3  ;;  %v639_v10 = vrot.slane %v638_v4, 4  ;;  %v655_v14 = vmul.f32 %v611_v5, %v484_v40 }
  0xfd   : > { %v613_v7 = vpop.f32.mrf.mxu0 }
  0xfe   : > { %v656_v9 = vmul.f32 %v613_v7, %v486_v41  ;;  %v648_v13 = vrot.slane %v647_v6, 4  ;;  %v640_v22 = vadd.f32 %v639_v10, %v638_v4 }
  0xff   : > { %v615_v11 = vpop.f32.mrf.mxu0  ;;  %v619_v12 = vpop.f32.mrf.mxu1 }
 0x100   : > { %v662_v15 = vadd.f32 %v656_v9, %v654_v8  ;;  %v657_v16 = vmul.f32 %v615_v11, %v488_v42  ;;  %v658_v17 = vmul.f32 %v619_v12, %v492_v44  ;;  %v649_v23 = vadd.f32 %v648_v13, %v647_v6 }
 0x101   : > { %v621_v18 = vpop.f32.mrf.mxu1  ;;  %v641_v30 = vrot.slane %v640_v22, 2 }
 0x102   : > { %v671_v19 = vadd.f32 %v657_v16, %v655_v14  ;;  %v659_v20 = vmul.f32 %v621_v18, %v494_v46  ;;  %v663_v24 = vadd.f32 %v662_v15, %v658_v17  ;;  %v650_v31 = vrot.slane %v649_v23, 2 }
 0x103   : > { %v623_v21 = vpop.f32.mrf.mxu1  ;;  %v642_v36 = vadd.f32 %v641_v30, %v640_v22 }
 0x104   : > { %v660_v25 = vmul.f32 %v623_v21, %v496_v50  ;;  %v672_v27 = vadd.f32 %v671_v19, %v659_v20  ;;  %v651_v37 = vadd.f32 %v650_v31, %v649_v23 }
 0x105   : > { %v625_v26 = vpop.f32.mrf.mxu1  ;;  %v643_v42 = vrot.slane %v642_v36, 1 }
 0x106   : > { %v664_v28 = vadd.f32 %v663_v24, %v660_v25  ;;  %v661_v29 = vmul.f32 %v625_v26, %v498_v59  ;;  %v652_v43 = vrot.slane %v651_v37, 1 }
 0x107   : > { %v644_v48 = vadd.f32 %v643_v42, %v642_v36 }
 0x108   : > { %v665_v32 = vrot.slane %v664_v28, 4  ;;  %v673_v33 = vadd.f32 %v672_v27, %v661_v29  ;;  %v653_v49 = vadd.f32 %v652_v43, %v651_v37 }
 0x10a   : > { %v666_v34 = vadd.f32 %v665_v32, %v664_v28  ;;  %v674_v35 = vrot.slane %v673_v33, 4 }
 0x10c   : > { %v667_v38 = vrot.slane %v666_v34, 2  ;;  %v675_v39 = vadd.f32 %v674_v35, %v673_v33 }
 0x10e   : > { %v668_v40 = vadd.f32 %v667_v38, %v666_v34  ;;  %v676_v41 = vrot.slane %v675_v39, 2 }
 0x110   : > { %v669_v44 = vrot.slane %v668_v40, 1  ;;  %v677_v45 = vadd.f32 %v676_v41, %v675_v39 }
 0x112   : > { %v670_v46 = vadd.f32 %v669_v44, %v668_v40  ;;  %v678_v47 = vrot.slane %v677_v45, 1 }
 0x114   : > { %v679_v50 = vadd.f32 %v678_v47, %v677_v45  ;;  %v681_v51 = vsel %vm680_vm5, %v644_v48, %v670_v46 }
 0x116   : > { %v682_v52 = vsel %vm680_vm5, %v653_v49, %v679_v50 }
 0x117   : > { %v685_v53 = vcombine.low %v681_v51, %v682_v52 }
 0x119   : > { %884 = vst.sshfl [vmem:[%s172_s30] sm:$0x33 pattern:$0x76325410] %v685_v53 }
 0x11a PF: > { %s13_s12 = sadd.s32 1, %s917_s12  }
 0x11b   : > { %p10_p4 = scmp.ge.s32.totalorder %s13_s12, 4  }
 0x11d   :  { %12 = sbr.rel (!%p10_p4) target bundleno = 1 (0x1), region = 64 }

</bundles_post_ra>
